<compile_context>
chip_gen: v7x
topology: tpu7x:2x2x1
jax: 0.10.0
libtpu: 0.0.40
codegen_flags: <defaults>
</compile_context>

<pallas_src>
import functools

import jax
import jax.numpy as jnp
from jax.experimental import pallas as pl
from jax.experimental.pallas import tpu as pltpu


def _round_up(x, m):
    return ((x + m - 1) // m) * m


def _vmem_capacity_bytes():
    """Physical VMEM per TensorCore; conservative 64 MiB (v7x) if unknown."""
    try:
        info = pltpu.get_tpu_info()
        cap = getattr(info, "vmem_capacity_bytes", None)
        if cap:
            return int(cap)
    except Exception:
        pass
    return 64 * 1024 * 1024


def _choose_tile_n(n_rows, d, kp, budget_bytes, x_bytes, q_bytes):
    """Largest row tile (multiple of 8) whose per-step VMEM fits the budget."""
    # TODO(synk): for K >= ~2048, chunk the argmin over Kp in 256-lane blocks to
    # cap the (TN, Kp) temporaries instead of shrinking TN.
    n8 = _round_up(n_rows, 8)
    # Resident codebook operands: e (Kp,D), -2*e^T (D,Kp), |e|^2 (1,Kp); assume
    # the pipeline still keeps two buffers for each despite the constant index_map.
    resident = 2 * (2 * kp * d + kp) * 4
    best = 8
    for tn in (8, 16, 32, 64, 128, 256, 512, 1024, 2048, 4096):
        if tn > n8:
            break
        per_tile = (2 * tn * d * x_bytes      # x, double-buffered, native dtype
                    + 2 * tn * d * q_bytes    # q, double-buffered, native dtype
                    + 6 * tn * kp * 4         # ~6 live (TN, Kp) f32/i32 temps
                    + 4 * tn * d * 4)         # (TN, D) f32 temps (x, q, diff, sq)
        if resident + per_tile <= budget_bytes:
            best = tn
    # Keep >= 2 grid steps when possible so the "parallel" N axis can span both
    # v7x TensorCores (negligible cost on single-TC v5e/v6e).
    if best >= n8 and n8 >= 16:
        best = min(best, _round_up((n8 + 1) // 2, 8))
    # Prefer a tile that divides N (no HBM row padding, no masked last tile),
    # but only if it does not shrink the tile by more than 2x.
    if n_rows % best != 0:
        for div in range(best - 8, best // 2 - 1, -8):
            if div >= 8 and n_rows % div == 0:
                best = div
                break
    return best


def _vq_kernel(x_ref, eT2_ref, e_ref, esq_ref, q_ref, loss_ref, *,
               tile_n, n_rows, k_padded, has_padding):
    x_f32 = x_ref[...].astype(jnp.float32)            # (TN, D)
    e = e_ref[...]                                    # (Kp, D), zero-padded rows
    e_sq = esq_ref[...]                               # (1, Kp), +inf padded cols

    # Cross term on the MXU; the -2 scale and the transpose are hoisted into
    # eT2 = (-2 e)^T in the wrapper (no per-tile XLU transpose / VPU multiply).
    cross = jnp.dot(x_ref[...].astype(eT2_ref.dtype), eT2_ref[...],
                    preferred_element_type=jnp.float32)   # (TN, Kp)

    # |x|^2 dropped (argmin over K is invariant to per-row constants); padded
    # columns are already +inf via e_sq, so no mask is needed here.
    dist = e_sq + cross                               # (TN, Kp)

    # argmin over K with first-minimal-index tie-break (matches torch.argmin).
    k_iota = jax.lax.broadcasted_iota(jnp.int32, dist.shape, 1)
    min_val = jnp.min(dist, axis=1, keepdims=True)    # (TN, 1)
    inds = jnp.min(jnp.where(dist == min_val, k_iota, k_padded),
                   axis=1, keepdims=True)             # (TN, 1)

    # one-hot gather via MXU matmul (kept f32 so the codeword is bit-exact).
    one_hot = (k_iota == inds).astype(jnp.float32)    # (TN, Kp)
    q = jnp.dot(one_hot, e, preferred_element_type=jnp.float32)   # (TN, D)
    q_ref[...] = q.astype(q_ref.dtype)

    # Per-tile partial of sum((q - x)^2); rows past the true N are masked only
    # on the last tile, and only when padding exists at all.
    diff = q - x_f32
    sq = diff * diff
    if has_padding:
        is_last = pl.program_id(0) == pl.num_programs(0) - 1

        @pl.when(jnp.logical_not(is_last))
        def _():
            loss_ref[...] = jnp.broadcast_to(jnp.sum(sq), loss_ref.shape)

        @pl.when(is_last)
        def _():
            row_ids = (pl.program_id(0) * tile_n
                       + jax.lax.broadcasted_iota(jnp.int32, (tile_n, 1), 0))
            partial = jnp.sum(jnp.where(row_ids < n_rows, sq, 0.0))
            loss_ref[...] = jnp.broadcast_to(partial, loss_ref.shape)
    else:
        loss_ref[...] = jnp.broadcast_to(jnp.sum(sq), loss_ref.shape)


def vector_quantizer_forward(latents, embedding, *, embedding_dim, beta=0.25,
                             use_bf16_matmul=False):
    """Forward pass of VectorQuantizer.  latents: (B, C*D); embedding: (K, D).

    Returns (quantized_latents_with_straight_through_estimator, vq_loss).
    """
    # TODO(synk): forward-only; training use would need a custom_vjp so vq_loss
    # gradients w.r.t. latents/embedding flow (the straight-through estimator
    # below only covers the quantized path).
    B, CD = latents.shape
    D = embedding_dim
    assert CD % D == 0, "latents last dim must be a multiple of embedding_dim"
    N = B * (CD // D)
    K = embedding.shape[0]
    Kp = _round_up(K, 128)

    vmem_cap = _vmem_capacity_bytes()
    if vmem_cap <= 64 * 1024 * 1024:             # v7x-class: 64 MiB per TensorCore
        budget_bytes = 24 * 1024 * 1024
        vmem_limit = 48 * 1024 * 1024
    else:                                        # v5e / v6e: 128 MiB physical VMEM
        budget_bytes = 88 * 1024 * 1024
        vmem_limit = 100 * 1024 * 1024

    x_bytes = jnp.dtype(latents.dtype).itemsize
    tile_n = _choose_tile_n(N, D, Kp, budget_bytes, x_bytes, x_bytes)
    Np = _round_up(N, tile_n)
    grid_n = Np // tile_n

    # x / q streamed in the latents' native dtype (halves HBM traffic for bf16).
    x_flat = latents.reshape(N, D)
    x_in = x_flat if Np == N else jnp.pad(x_flat, ((0, Np - N), (0, 0)))

    # Hoisted codebook operands (computed once, VMEM-resident in the kernel).
    e_pad = jnp.pad(embedding.astype(jnp.float32), ((0, Kp - K), (0, 0)))
    e_sq = jnp.sum(e_pad * e_pad, axis=1)
    e_sq = jnp.where(jnp.arange(Kp) < K, e_sq, jnp.inf)[None, :]   # (1, Kp)
    eT2 = (-2.0 * e_pad).T                                         # (D, Kp)
    if use_bf16_matmul:
        # Optional training-time speedup (~3x MXU throughput); rare argmin tie
        # flips possible vs the f32 reference.
        eT2 = eT2.astype(jnp.bfloat16)

    kernel = functools.partial(_vq_kernel, tile_n=tile_n, n_rows=N,
                               k_padded=Kp, has_padding=(Np != N))

    cost = pl.CostEstimate(
        flops=4 * Np * Kp * D,                        # cross matmul + one-hot gather
        transcendentals=0,
        bytes_accessed=(x_bytes * 2 * Np * D          # x read + q write
                        + 4 * (2 * Kp * D + Kp)       # e, -2 e^T, |e|^2
                        + 4 * grid_n * 8 * 128),      # loss partials
    )

    q_pad, loss_parts = pl.pallas_call(
        kernel,
        out_shape=(
            jax.ShapeDtypeStruct((Np, D), latents.dtype),
            jax.ShapeDtypeStruct((grid_n, 8, 128), jnp.float32),
        ),
        grid=(grid_n,),
        in_specs=[
            pl.BlockSpec((tile_n, D), lambda i: (i, 0)),     # x tile (pipelined)
            pl.BlockSpec((D, Kp), lambda i: (0, 0)),         # -2 e^T, resident
            pl.BlockSpec((Kp, D), lambda i: (0, 0)),         # e, resident (gather)
            pl.BlockSpec((1, Kp), lambda i: (0, 0)),         # |e|^2 (+inf padded)
        ],
        out_specs=(
            pl.BlockSpec((tile_n, D), lambda i: (i, 0)),     # quantized tile
            pl.BlockSpec((1, 8, 128), lambda i: (i, 0, 0)),  # per-tile loss partial
        ),
        compiler_params=pltpu.CompilerParams(
            dimension_semantics=("parallel",),
            vmem_limit_bytes=vmem_limit,
        ),
        cost_estimate=cost,
    )(x_in, eT2, e_pad, e_sq)

    quantized = q_pad[:N].reshape(B, CD)
    # Straight-through estimator (forward value == quantized).
    quantized_st = latents + jax.lax.stop_gradient(quantized - latents)
    # vq_loss = beta * commitment + embedding = (1 + beta) * mean_B(sum((q - x)^2)).
    vq_loss = (1.0 + beta) * jnp.sum(loss_parts[:, 0, 0]) / B
    return quantized_st, vq_loss


def _reference(latents, embedding, *, embedding_dim, beta=0.25):
    B, CD = latents.shape
    D = embedding_dim
    N = B * (CD // D)
    x = latents.reshape(N, D).astype(jnp.float32)
    e = embedding.astype(jnp.float32)
    dist = (jnp.sum(x ** 2, axis=1, keepdims=True)
            + jnp.sum(e ** 2, axis=1)
            - 2.0 * x @ e.T)
    inds = jnp.argmin(dist, axis=1)
    q = e[inds].reshape(B, CD)
    per_batch = jnp.sum((q - latents) ** 2, axis=1)
    loss = (1.0 + beta) * jnp.mean(per_batch)
    return q, loss


if __name__ == "__main__":
    # Small shapes consistent with the module: B=2, C*D=512 (C=4, D=128), K=64.
    B, D, K = 2, 128, 64
    C = 4
    CD = C * D
    beta = 0.25

    key = jax.random.PRNGKey(0)
    k_lat, k_emb = jax.random.split(key)
    latents = jax.random.normal(k_lat, (B, CD), dtype=jnp.float32)
    # nn.Embedding(K, D).weight.data.uniform_(-1/K, 1/K), deterministic init.
    embedding = jax.random.uniform(k_emb, (K, D), dtype=jnp.float32,
                                   minval=-1.0 / K, maxval=1.0 / K)

    q, vq_loss = vector_quantizer_forward(latents, embedding,
                                          embedding_dim=D, beta=beta)
    q = jax.block_until_ready(q)
    vq_loss = jax.block_until_ready(vq_loss)

    q_ref, loss_ref = _reference(latents, embedding,
                                 embedding_dim=D, beta=beta)
    assert jnp.allclose(q, q_ref, atol=1e-5, rtol=1e-5)
    assert jnp.allclose(vq_loss, loss_ref, atol=1e-4, rtol=1e-4)

    print("KERNEL_OK")
</pallas_src>

<mosaic_0001>
module attributes {stable_mosaic.version = 11 : i64} {
  func.func @_vq_kernel(%arg0: i32, %arg1: memref<8x128xf32, #tpu.memory_space<vmem>>, %arg2: memref<128x128xf32, #tpu.memory_space<vmem>>, %arg3: memref<128x128xf32, #tpu.memory_space<vmem>>, %arg4: memref<1x128xf32, #tpu.memory_space<vmem>>, %arg5: memref<8x128xf32, #tpu.memory_space<vmem>>, %arg6: memref<1x8x128xf32, #tpu.memory_space<vmem>>) attributes {dimension_semantics = [#tpu.dimension_semantics<parallel>], iteration_bounds = array<i64: 1>, scalar_prefetch = 0 : i64, scratch_operands = 0 : i64, tpu.core_type = #tpu.core_type<tc>, window_params = [{transform_indices = @transform_0, window_bounds = array<i64: 8, 128>}, {pipeline_mode = #tpu.pipeline_mode<synchronous>, transform_indices = @transform_1, window_bounds = array<i64: 128, 128>}, {pipeline_mode = #tpu.pipeline_mode<synchronous>, transform_indices = @transform_2, window_bounds = array<i64: 128, 128>}, {pipeline_mode = #tpu.pipeline_mode<synchronous>, transform_indices = @transform_3, window_bounds = array<i64: 1, 128>}, {transform_indices = @transform_4, window_bounds = array<i64: 8, 128>}, {transform_indices = @transform_5, window_bounds = array<i64: 1, 8, 128>}]} {
    %c0 = arith.constant 0 : index
    %c0_0 = arith.constant 0 : index
    %0 = vector.load %arg1[%c0, %c0_0] : memref<8x128xf32, #tpu.memory_space<vmem>>, vector<8x128xf32>
    %c0_1 = arith.constant 0 : index
    %c0_2 = arith.constant 0 : index
    %1 = vector.load %arg3[%c0_1, %c0_2] : memref<128x128xf32, #tpu.memory_space<vmem>>, vector<128x128xf32>
    %c0_3 = arith.constant 0 : index
    %c0_4 = arith.constant 0 : index
    %2 = vector.load %arg4[%c0_3, %c0_4] : memref<1x128xf32, #tpu.memory_space<vmem>>, vector<1x128xf32>
    %c0_5 = arith.constant 0 : index
    %c0_6 = arith.constant 0 : index
    %3 = vector.load %arg1[%c0_5, %c0_6] : memref<8x128xf32, #tpu.memory_space<vmem>>, vector<8x128xf32>
    %c0_7 = arith.constant 0 : index
    %c0_8 = arith.constant 0 : index
    %4 = vector.load %arg2[%c0_7, %c0_8] : memref<128x128xf32, #tpu.memory_space<vmem>>, vector<128x128xf32>
    %cst = arith.constant dense<0.000000e+00> : vector<8x128xf32>
    %5 = tpu.matmul %3, %4, %cst {dimension_numbers = #tpu.dot_dimension_numbers<[1], [0], [0], [1], [0, 0, 1, 1], [], []>} : vector<8x128xf32>, vector<128x128xf32>, vector<8x128xf32> -> vector<8x128xf32>
    %6 = vector.broadcast %2 : vector<1x128xf32> to vector<8x128xf32>
    %7 = arith.addf %6, %5 : vector<8x128xf32>
    %8 = tpu.iota {dimensions = array<i32: 1>} : vector<8x128xi32>
    %cst_9 = arith.constant dense<0x7F800000> : vector<8xf32>
    %9 = vector.multi_reduction <minimumf>, %7, %cst_9 [1] : vector<8x128xf32> to vector<8xf32>
    %10 = vector.shape_cast %9 : vector<8xf32> to vector<8x1xf32>
    %11 = vector.broadcast %10 : vector<8x1xf32> to vector<8x128xf32>
    %12 = arith.cmpf oeq, %7, %11 : vector<8x128xf32>
    %c128_i32 = arith.constant 128 : i32
    %13 = vector.broadcast %c128_i32 : i32 to vector<8x128xi32>
    %14 = arith.select %12, %8, %13 : vector<8x128xi1>, vector<8x128xi32>
    %cst_10 = arith.constant dense<2147483647> : vector<8xi32>
    %15 = vector.multi_reduction <minsi>, %14, %cst_10 [1] : vector<8x128xi32> to vector<8xi32>
    %16 = vector.shape_cast %15 : vector<8xi32> to vector<8x1xi32>
    %17 = vector.broadcast %16 : vector<8x1xi32> to vector<8x128xi32>
    %18 = arith.cmpi eq, %8, %17 : vector<8x128xi32>
    %19 = arith.extui %18 : vector<8x128xi1> to vector<8x128xi32>
    %20 = arith.sitofp %19 : vector<8x128xi32> to vector<8x128xf32>
    %cst_11 = arith.constant dense<0.000000e+00> : vector<8x128xf32>
    %21 = tpu.matmul %20, %1, %cst_11 {dimension_numbers = #tpu.dot_dimension_numbers<[1], [0], [0], [1], [0, 0, 1, 1], [], []>} : vector<8x128xf32>, vector<128x128xf32>, vector<8x128xf32> -> vector<8x128xf32>
    %c0_12 = arith.constant 0 : index
    %c0_13 = arith.constant 0 : index
    %22 = vector.load %arg5[%c0_12, %c0_13] : memref<8x128xf32, #tpu.memory_space<vmem>>, vector<8x128xf32>
    tpu.vector_store %arg5[%c0_12, %c0_13], %21 {strides = array<i32>} : memref<8x128xf32, #tpu.memory_space<vmem>>, vector<8x128xf32>,
    %23 = arith.subf %21, %0 : vector<8x128xf32>
    %24 = arith.mulf %23, %23 : vector<8x128xf32>
    %25 = vector.shape_cast %24 : vector<8x128xf32> to vector<1x8x128xf32>
    %cst_14 = arith.constant dense<0.000000e+00> : vector<1xf32>
    %26 = vector.multi_reduction <add>, %25, %cst_14 [1, 2] : vector<1x8x128xf32> to vector<1xf32>
    %27 = vector.shape_cast %26 : vector<1xf32> to vector<1x1x1xf32>
    %28 = vector.extract %27[0, 0, 0] : f32 from vector<1x1x1xf32>
    %29 = vector.broadcast %28 : f32 to vector<1x8x128xf32>
    %c0_15 = arith.constant 0 : index
    %c0_16 = arith.constant 0 : index
    %c0_17 = arith.constant 0 : index
    %30 = vector.load %arg6[%c0_15, %c0_16, %c0_17] : memref<1x8x128xf32, #tpu.memory_space<vmem>>, vector<1x8x128xf32>
    tpu.vector_store %arg6[%c0_15, %c0_16, %c0_17], %29 {strides = array<i32>} : memref<1x8x128xf32, #tpu.memory_space<vmem>>, vector<1x8x128xf32>,
    return
  }
  func.func @transform_0(%arg0: i32) -> (i32, i32) {
    %c0_i32 = arith.constant 0 : i32
    %c0_i32_0 = arith.constant 0 : i32
    return %arg0, %c0_i32 : i32, i32
  }
  func.func @transform_1(%arg0: i32) -> (i32, i32) {
    %c0_i32 = arith.constant 0 : i32
    %c0_i32_0 = arith.constant 0 : i32
    %c0_i32_1 = arith.constant 0 : i32
    return %c0_i32, %c0_i32_0 : i32, i32
  }
  func.func @transform_2(%arg0: i32) -> (i32, i32) {
    %c0_i32 = arith.constant 0 : i32
    %c0_i32_0 = arith.constant 0 : i32
    %c0_i32_1 = arith.constant 0 : i32
    return %c0_i32, %c0_i32_0 : i32, i32
  }
  func.func @transform_3(%arg0: i32) -> (i32, i32) {
    %c0_i32 = arith.constant 0 : i32
    %c0_i32_0 = arith.constant 0 : i32
    %c0_i32_1 = arith.constant 0 : i32
    return %c0_i32, %c0_i32_0 : i32, i32
  }
  func.func @transform_4(%arg0: i32) -> (i32, i32) {
    %c0_i32 = arith.constant 0 : i32
    %c0_i32_0 = arith.constant 0 : i32
    return %arg0, %c0_i32 : i32, i32
  }
  func.func @transform_5(%arg0: i32) -> (i32, i32, i32) {
    %c0_i32 = arith.constant 0 : i32
    %c0_i32_0 = arith.constant 0 : i32
    %c0_i32_1 = arith.constant 0 : i32
    return %arg0, %c0_i32, %c0_i32_0 : i32, i32, i32
  }
}

</mosaic_0001>

<bundles_post_ra>
// kernel: tpu_custom_call.1
= control target key start
LH: loop header
LB: loop body
LE: loop exit
PB: predicated region body
PF: predicated region fallthrough
CT: control target
= control target key end

     0   :  { %11 = vsyncpa [#allocation3], 0  ;;  %s724_s0 = inlined_call_operand.hbm [shape: f32[8,128], index: 0, kind: input, shape index: {}]   ;;  %s725_s1 = inlined_call_operand.hbm [shape: f32[128,128], index: 1, kind: input, shape index: {}]   ;;  %s726_s2 = inlined_call_operand.hbm [shape: f32[128,128], index: 2, kind: input, shape index: {}]   ;;  %s727_s3 = inlined_call_operand.vmem [shape: f32[1,128], index: 3, kind: input, shape index: {}]   ;;  %s728_s4 = inlined_call_operand.hbm [shape: f32[8,128], index: 4, kind: output, shape index: {0}]   ;;  %s729_s5 = inlined_call_operand.hbm [shape: f32[1,8,128], index: 5, kind: output, shape index: {1}]  }
   0x1   :  { %12 = vsyncpa [#allocation6], 0 }
   0x2   :  { %13 = vsyncpa [#allocation4], 0 }
   0x3   :  { %14 = vsyncpa [#allocation10], 0  ;;  %s594_s18 = smov [#allocation5]   ;;  %s476_s22 = scalar_lea.hbm %s725_s1, 2048 }
   0x4   :  { %s30_s19 = sshll.u32 %s594_s18, 4  ;;  %p477_p0 = scmp.ne.s32.totalorder %s725_s1, %s476_s22  ;;  %s31_s19 = int_to_ptr.vmem [resolvable:$true] %s30_s19 }
   0x5   :  { %p480_p1 = scmp.lt.u32.totalorder %s476_s22, %s725_s1 }
   0x7   :  { %p482_p2 = pnand %p480_p1, %p477_p0 }
   0x9   :  { %485 = shalt.err (!%p482_p2)
}
   0xa   :  { %s486_s27 = scalar_lea.vmem %s31_s19, 2048  ;;  %p491_p4 = scmp.lt.s32.totalorder %s31_s19, %s31_s19 }
   0xb   :  { %p487_p3 = scmp.ne.s32.totalorder %s31_s19, %s486_s27  ;;  %p492_p5 = scmp.lt.s32.totalorder %s486_s27, %s486_s27 }
   0xd   :  { %p493_p6 = por %p492_p5, %p491_p4 }
   0xf   :  { %p494_p7 = pnand %p493_p6, %p487_p3 }
  0x11   :  { %497 = shalt.err (!%p494_p7)
}
  0x12   :  { %s595_s28 = smov 128   ;;  %s596_s29 = smov 8  }
  0x13   :  { %36 = dma.hbm_to_vmem [thread:$0]  %s725_s1, 2048, %s31_s19, [#allocation6], %s595_s28, %s595_s28, %s596_s29  }
  0x14   :  { %s597_s7 = smov [#allocation2]   ;;  %s598_s9 = smov [#allocation7]  }
  0x15   :  { %s21_s8 = sshll.u32 %s597_s7, 4  ;;  %s42_s10 = sshll.u32 %s598_s9, 4  ;;  %s22_s8 = int_to_ptr.vmem [resolvable:$true] %s21_s8  ;;  %s43_s10 = int_to_ptr.vmem [resolvable:$true] %s42_s10 }
  0x16   :  { %s498_s13 = scalar_lea.hbm %s724_s0, 128 }
  0x17   :  { %p499_p8 = scmp.ne.s32.totalorder %s724_s0, %s498_s13  ;;  %p502_p9 = scmp.lt.u32.totalorder %s498_s13, %s724_s0 }
  0x19   :  { %p504_p10 = pnand %p502_p9, %p499_p8 }
  0x1b   :  { %507 = shalt.err (!%p504_p10)
}
  0x1c   :  { %s508_s1 = scalar_lea.vmem %s22_s8, 128  ;;  %p513_p12 = scmp.lt.s32.totalorder %s22_s8, %s22_s8 }
  0x1d   :  { %p509_p11 = scmp.ne.s32.totalorder %s22_s8, %s508_s1  ;;  %p514_p13 = scmp.lt.s32.totalorder %s508_s1, %s508_s1 }
  0x1f   :  { %p515_p0 = por %p514_p13, %p513_p12 }
  0x21   :  { %p516_p1 = pnand %p515_p0, %p509_p11 }
  0x23   :  { %519 = shalt.err (!%p516_p1)
}
  0x24   :  { %24 = dma.hbm_to_vmem [thread:$0]  %s724_s0, 128, %s22_s8, [#allocation3]  }
  0x25   :  { %s520_s22 = scalar_lea.hbm %s726_s2, 2048 }
  0x26   :  { %p521_p2 = scmp.ne.s32.totalorder %s726_s2, %s520_s22  ;;  %p524_p3 = scmp.lt.u32.totalorder %s520_s22, %s726_s2 }
  0x28   :  { %p526_p4 = pnand %p524_p3, %p521_p2 }
  0x2a   :  { %529 = shalt.err (!%p526_p4)
}
  0x2b   :  { %s530_s27 = scalar_lea.vmem %s43_s10, 2048  ;;  %p535_p6 = scmp.lt.s32.totalorder %s43_s10, %s43_s10 }
  0x2c   :  { %p531_p5 = scmp.ne.s32.totalorder %s43_s10, %s530_s27  ;;  %p536_p7 = scmp.lt.s32.totalorder %s530_s27, %s530_s27 }
  0x2e   :  { %p537_p8 = por %p536_p7, %p535_p6 }
  0x30   :  { %p538_p9 = pnand %p537_p8, %p531_p5 }
  0x32   :  { %541 = shalt.err (!%p538_p9)
}
  0x33   :  { %48 = dma.hbm_to_vmem [thread:$0]  %s726_s2, 2048, %s43_s10, [#allocation6], %s595_s28, %s595_s28, %s596_s29  }
  0x34   :  { %586 = dma.done.wait [#allocation3], 128  }
  0x35   :  { %587 = vsyncadd [#allocation3], 4294967168 }
  0x36   :  { %588 = dma.done.wait [#allocation6], 4096  }
  0x37   :  { %589 = vsyncadd [#allocation6], 4294963200  ;;  %v599_v0 = vmov 0.0|0.0   ;;  %vm600_vm0 = vmmov 0   ;;  %v601_v1 = vmov 0.0   ;;  %v78_v2 = vld [vmem:[#allocation5] sm:$0xff]  ;;  %v171_v31 = vlaneseq }
  0x38   :  { %415 = vmatprep.subr.bf16.mxu0 %v599_v0  ;;  %377 = vmatprep.mubr.msk.f32.mxu0 %vm600_vm0, %v601_v1  ;;  %v79_v3 = vld [vmem:[#allocation5 + $0x8] sm:$0xff]  ;;  %v80_v4 = vld [vmem:[#allocation5 + $0x10] sm:$0xff]  ;;  %v81_v6 = vld [vmem:[#allocation5 + $0x18] sm:$0xff] }
  0x39   :  { %439 = vmatprep.subr.bf16.mxu1 %v599_v0  ;;  %412 = vmatprep.mubr.msk.f32.mxu1 %vm600_vm0, %v601_v1  ;;  %v416_v5 = vpack.c.bf16 %v79_v3, %v78_v2  ;;  %v419_v7 = vpack.c.bf16 %v81_v6, %v80_v4  ;;  %v82_v8 = vld [vmem:[#allocation5 + $0x20] sm:$0xff]  ;;  %v83_v9 = vld [vmem:[#allocation5 + $0x28] sm:$0xff]  ;;  %v84_v11 = vld [vmem:[#allocation5 + $0x30] sm:$0xff]  ;;  %v172_v32 = vand.u32 127, %v171_v31 }
  0x3a   :  { %v422_v10 = vpack.c.bf16 %v83_v9, %v82_v8  ;;  %v85_v12 = vld [vmem:[#allocation5 + $0x38] sm:$0xff]  ;;  %v86_v14 = vld [vmem:[#allocation5 + $0x40] sm:$0xff]  ;;  %v87_v15 = vld [vmem:[#allocation5 + $0x48] sm:$0xff] }
  0x3b   :  { %417 = vmatpush3.bf16.msra.mxu0 %v416_v5  ;;  %v425_v13 = vpack.c.bf16 %v85_v12, %v84_v11  ;;  %v428_v16 = vpack.c.bf16 %v87_v15, %v86_v14  ;;  %v88_v17 = vld [vmem:[#allocation5 + $0x50] sm:$0xff]  ;;  %v89_v18 = vld [vmem:[#allocation5 + $0x58] sm:$0xff]  ;;  %v90_v20 = vld [vmem:[#allocation5 + $0x60] sm:$0xff] }
  0x3c   :  { %418 = vmatprep.subr.bf16.mxu0 %v599_v0  ;;  %v431_v19 = vpack.c.bf16 %v89_v18, %v88_v17  ;;  %v91_v21 = vld [vmem:[#allocation5 + $0x68] sm:$0xff]  ;;  %v92_v23 = vld [vmem:[#allocation5 + $0x70] sm:$0xff]  ;;  %v93_v24 = vld [vmem:[#allocation5 + $0x78] sm:$0xff] }
  0x3d   :  { %v434_v22 = vpack.c.bf16 %v91_v21, %v90_v20  ;;  %v437_v25 = vpack.c.bf16 %v93_v24, %v92_v23  ;;  %v686_v26 = vld [vmem:[#allocation2] sm:$0xff]  ;;  %v61_v37 = vld [vmem:[#allocation7] sm:$0xff]  ;;  %v62_v38 = vld [vmem:[#allocation7 + $0x8] sm:$0xff] }
  0x3e   :  { %v308_v27 = vld [vmem:[%s727_s3] ss:$0 sm:$0xff]  ;;  %v63_v39 = vld [vmem:[#allocation7 + $0x10] sm:$0xff]  ;;  %v440_v40 = vpack.c.bf16 %v62_v38, %v61_v37  ;;  %v65_v43 = vld [vmem:[#allocation7 + $0x20] sm:$0xff]  ;;  %s603_s3 = smov [#allocation8]  }
  0x3f   :  { %420 = vmatpush3.bf16.msra.mxu0 %v419_v7  ;;  %v64_v41 = vld [vmem:[#allocation7 + $0x18] sm:$0xff]  ;;  %v66_v44 = vld [vmem:[#allocation7 + $0x28] sm:$0xff]  ;;  %v67_v46 = vld [vmem:[#allocation7 + $0x30] sm:$0xff]  ;;  %v602_v7 = vmov 1.0   ;;  %s284_s29 = sshll.u32 %s603_s3, 4  ;;  %s285_s29 = int_to_ptr.vmem [resolvable:$true] %s284_s29 }
  0x40   :  { %421 = vmatprep.subr.bf16.mxu0 %v599_v0  ;;  %441 = vmatpush3.bf16.msra.mxu1 %v440_v40  ;;  %v443_v42 = vpack.c.bf16 %v64_v41, %v63_v39  ;;  %v446_v45 = vpack.c.bf16 %v66_v44, %v65_v43  ;;  %v68_v47 = vld [vmem:[#allocation7 + $0x38] sm:$0xff]  ;;  %v69_v49 = vld [vmem:[#allocation7 + $0x40] sm:$0xff]  ;;  %v70_v50 = vld [vmem:[#allocation7 + $0x48] sm:$0xff]  ;;  %s542_s6 = scalar_lea.vmem %s285_s29, 128  ;;  %p547_p11 = scmp.lt.s32.totalorder %s285_s29, %s285_s29 }
  0x41   :  { %442 = vmatprep.subr.bf16.mxu1 %v599_v0  ;;  %v449_v48 = vpack.c.bf16 %v68_v47, %v67_v46  ;;  %v452_v51 = vpack.c.bf16 %v70_v50, %v69_v49  ;;  %v71_v52 = vld [vmem:[#allocation7 + $0x50] sm:$0xff]  ;;  %v72_v53 = vld [vmem:[#allocation7 + $0x58] sm:$0xff]  ;;  %v73_v55 = vld [vmem:[#allocation7 + $0x60] sm:$0xff]  ;;  %p543_p10 = scmp.ne.s32.totalorder %s285_s29, %s542_s6  ;;  %p548_p12 = scmp.lt.s32.totalorder %s542_s6, %s542_s6 }
  0x42   :  { %v455_v54 = vpack.c.bf16 %v72_v53, %v71_v52  ;;  %v74_v56 = vld [vmem:[#allocation7 + $0x68] sm:$0xff]  ;;  %v75_v62 = vld [vmem:[#allocation7 + $0x70] sm:$0xff]  ;;  %v76_v63 = vld [vmem:[#allocation7 + $0x78] sm:$0xff] }
  0x43   :  { %423 = vmatpush3.bf16.msra.mxu0 %v422_v10  ;;  %v458_v57 = vpack.c.bf16 %v74_v56, %v73_v55  ;;  %v461_v1 = vpack.c.bf16 %v76_v63, %v75_v62  ;;  %p549_p13 = por %p548_p12, %p547_p11 }
  0x44   :  { %424 = vmatprep.subr.bf16.mxu0 %v599_v0  ;;  %444 = vmatpush3.bf16.msra.mxu1 %v443_v42 }
  0x45   :  { %445 = vmatprep.subr.bf16.mxu1 %v599_v0  ;;  %p550_p0 = pnand %p549_p13, %p543_p10 }
  0x47   :  { %426 = vmatpush3.bf16.msra.mxu0 %v425_v13 }
  0x48   :  { %427 = vmatprep.subr.bf16.mxu0 %v599_v0  ;;  %447 = vmatpush3.bf16.msra.mxu1 %v446_v45 }
  0x49   :  { %448 = vmatprep.subr.bf16.mxu1 %v599_v0 }
  0x4b   :  { %429 = vmatpush3.bf16.msra.mxu0 %v428_v16 }
  0x4c   :  { %430 = vmatprep.subr.bf16.mxu0 %v599_v0  ;;  %450 = vmatpush3.bf16.msra.mxu1 %v449_v48 }
  0x4d   :  { %451 = vmatprep.subr.bf16.mxu1 %v599_v0 }
  0x4f   :  { %432 = vmatpush3.bf16.msra.mxu0 %v431_v19 }
  0x50   :  { %433 = vmatprep.subr.bf16.mxu0 %v599_v0  ;;  %453 = vmatpush3.bf16.msra.mxu1 %v452_v51 }
  0x51   :  { %454 = vmatprep.subr.bf16.mxu1 %v599_v0 }
  0x53   :  { %435 = vmatpush3.bf16.msra.mxu0 %v434_v22 }
  0x54   :  { %436 = vmatprep.subr.bf16.mxu0 %v599_v0  ;;  %456 = vmatpush3.bf16.msra.mxu1 %v455_v54 }
  0x55   :  { %457 = vmatprep.subr.bf16.mxu1 %v599_v0 }
  0x57   :  { %438 = vmatpush3.bf16.msra.mxu0 %v437_v25 }
  0x58   :  { %459 = vmatpush3.bf16.msra.mxu1 %v458_v57 }
  0x59   :  { %460 = vmatprep.subr.bf16.mxu1 %v599_v0 }
  0x5a   :  { %378 = vmatmul.mubr.f32.vlgmr.msra.gmra.mrb[0].mxu0 %v686_v26 }
  0x5c   :  { %462 = vmatpush3.bf16.msra.mxu1 %v461_v1 }
 0x12d   :  { %v160_v28 = vpop.f32.mrb[0].mxu0 }
 0x12e   :  { %v170_v29 = vadd.f32 %v308_v27, %v160_v28  ;;  %v379_v30 = vpop.f32.mrb[1].mxu0 }
 0x130   :  { %173 = vmin.xlane.f32.xlu0 %v170_v29 }
 0x1bd   :  { %v174_v33 = vpop.xlane.xlu0 %173 }
 0x1be   :  { %vm175_vm1 = vcmp.eq.f32.partialorder %v170_v29, %v174_v33 }
 0x1bf   :  { %v176_v34 = vsel %vm175_vm1, %v172_v32, 128 }
 0x1c0   :  { %v178_v35 = vshra.s32 %v176_v34, 16  ;;  %v177_v58 = vand.u32 65535, %v176_v34 }
 0x1c2   :  { %v180_v36 = vcvt.s32.f32 %v178_v35  ;;  %v179_v60 = vcvt.s32.f32 %v177_v58 }
 0x1c4   :  { %181 = vmin.xlane.f32.xlu0 %v180_v36 }
 0x251   :  { %v182_v59 = vpop.xlane.xlu0 %181 }
 0x252   :  { %vm183_vm2 = vcmp.eq.f32.partialorder %v180_v36, %v182_v59  ;;  %v188_v2 = vcvt.f32.s32 %v182_v59 }
 0x253   :  { %v184_v61 = vsel %vm183_vm2, %v179_v60, inf }
 0x254   :  { %185 = vmin.xlane.f32.xlu1 %v184_v61  ;;  %v189_v4 = vshll.u32 %v188_v2, 16 }
 0x2e1   :  { %v186_v3 = vpop.xlane.xlu1 %185 }
 0x2e2   :  { %v187_v5 = vcvt.f32.s32 %v186_v3 }
 0x2e4   :  { %v190_v6 = vadd.s32 %v189_v4, %v187_v5 }
 0x2e6   :  { %vm191_vm3 = vcmp.eq.s32.totalorder %v172_v32, %v190_v6 }
 0x2e7   :  { %413 = vmatmul.mubr.msk.f32.vlgmr.msra.gmra.mrb[0].mxu1 %vm191_vm3, %v602_v7 }
 0x3ba   :  { %v260_v8 = vpop.f32.mrb[0].mxu1 }
 0x3bb   :  { %v265_v0 = vsub.f32 %v260_v8, %v686_v26  ;;  %264 = vst [vmem:[#allocation8] sm:$0xff] %v260_v8  ;;  %v414_v9 = vpop.f32.mrb[1].mxu1 }
 0x3bd   :  { %v266_v10 = vmul.f32 %v265_v0, %v265_v0 }
 0x3bf   :  { %267 = vadd.xlane.f32.xlu1 %v266_v10 }
 0x3c0   :  { %553 = shalt.err (!%p550_p0)
}
 0x3c1   :  { %s554_s9 = scalar_lea.hbm %s728_s4, 128 }
 0x3c2   :  { %p555_p1 = scmp.ne.s32.totalorder %s728_s4, %s554_s9  ;;  %p558_p2 = scmp.lt.u32.totalorder %s554_s9, %s728_s4 }
 0x3c4   :  { %p560_p3 = pnand %p558_p2, %p555_p1 }
 0x3c6   :  { %563 = shalt.err (!%p560_p3)
}
 0x3c7   :  { %287 = dma.vmem_to_hbm [thread:$0]  %s285_s29, 128, %s728_s4, [#allocation4]  }
 0x3c8   :  { %s604_s16 = smov [#allocation9]  }
 0x3c9   :  { %s294_s17 = sshll.u32 %s604_s16, 4  ;;  %s295_s17 = int_to_ptr.vmem [resolvable:$true] %s294_s17 }
 0x3ca   :  { %s564_s18 = scalar_lea.vmem %s295_s17, 128  ;;  %p569_p5 = scmp.lt.s32.totalorder %s295_s17, %s295_s17 }
 0x3cb   :  { %p565_p4 = scmp.ne.s32.totalorder %s295_s17, %s564_s18  ;;  %p570_p6 = scmp.lt.s32.totalorder %s564_s18, %s564_s18 }
 0x3cd   :  { %p571_p7 = por %p570_p6, %p569_p5 }
 0x3cf   :  { %p572_p8 = pnand %p571_p7, %p565_p4 }
 0x44c   :  { %v268_v11 = vpop.xlane.xlu1 %267 }
 0x44d   :  { %v269_v12 = vrot.slane %v268_v11, 4 }
 0x44f   :  { %v270_v13 = vadd.f32 %v269_v12, %v268_v11 }
 0x451   :  { %v271_v14 = vrot.slane %v270_v13, 2 }
 0x453   :  { %v272_v15 = vadd.f32 %v271_v14, %v270_v13 }
 0x455   :  { %v273_v16 = vrot.slane %v272_v15, 1 }
 0x457   :  { %v274_v17 = vadd.f32 %v273_v16, %v272_v15 }
 0x459   :  { %463 = vpush %v274_v17 }
 0x48a   :  { %s464_s1 = spop %463 }
 0x48b   :  { %v276_v18 = vstv %s464_s1 }
 0x48c   :  { %277 = vst [vmem:[#allocation9] sm:$0xff] %v276_v18 }
 0x48d   :  { %575 = shalt.err (!%p572_p8)
}
 0x48e   :  { %s576_s20 = scalar_lea.hbm %s729_s5, 128 }
 0x48f   :  { %p577_p9 = scmp.ne.s32.totalorder %s729_s5, %s576_s20  ;;  %p580_p10 = scmp.lt.u32.totalorder %s576_s20, %s729_s5 }
 0x491   :  { %p582_p11 = pnand %p580_p10, %p577_p9 }
 0x493   :  { %585 = shalt.err (!%p582_p11)
}
 0x494   :  { %297 = dma.vmem_to_hbm [thread:$0]  %s295_s17, 128, %s729_s5, [#allocation10]  }
 0x495   :  { %590 = dma.done.wait [#allocation4], 128  }
 0x496   :  { %591 = vsyncadd [#allocation4], 4294967168 }
 0x497   :  { %592 = dma.done.wait [#allocation10], 128  }
 0x498   :  { %593 = vsyncadd [#allocation10], 4294967168 }
 0x499   :  { %304 = vsyncpa [#allocation3], 1 }
 0x49a   :  { %305 = vsyncpa [#allocation6], 1 }
 0x49b   :  { %306 = vsyncpa [#allocation4], 1 }
 0x49c   :  { %307 = vsyncpa [#allocation10], 1 }

</bundles_post_ra>
